<compile_context>
chip_gen: v6e
topology: v6e:2x2x1
jax: 0.10.0
libtpu: 0.0.40
codegen_flags: <defaults>
</compile_context>

<pallas_src>
import jax
import jax.numpy as jnp
from jax.experimental import pallas as pl
from jax.experimental.pallas import tpu as pltpu

_LANE = 128
_ROW_PACK = 16          # bf16 packs 16 rows per vreg tile


def _round_up(v, m):
    return (v + m - 1) // m * m


def _cdiv(a, b):
    return (a + b - 1) // b


def _device_config():
    """Per-generation tile caps / core count / VMEM ceiling."""
    try:
        kind = jax.devices()[0].device_kind.lower()
    except Exception:
        kind = ""
    if "v5 lite" in kind or "v5lite" in kind or "v5e" in kind:
        # 16 MiB default scoped VMEM (128 MiB physical): smaller K tile, 1 TC.
        return dict(tm_max=512, tk_max=1024, cores=1, vmem_cap=64 << 20)
    if "v7" in kind:
        # 2 TensorCores / chip, 64 MiB physical VMEM per core.
        return dict(tm_max=512, tk_max=2048, cores=2, vmem_cap=48 << 20)
    if "v4" in kind or ("v5" in kind and "lite" not in kind):
        # v4 / v5p megacore: 2 cores per chip.
        return dict(tm_max=512, tk_max=2048, cores=2, vmem_cap=64 << 20)
    # v6e and default.
    return dict(tm_max=512, tk_max=2048, cores=1, vmem_cap=64 << 20)


def _pad2d(a, shape):
    if tuple(a.shape) == tuple(shape):
        return a
    return jnp.pad(a, ((0, shape[0] - a.shape[0]), (0, shape[1] - a.shape[1])))


def _pick_tk(k_pad, tk_cap):
    """Largest multiple of 128 that divides k_pad and is <= tk_cap."""
    q = k_pad // _LANE
    cap_q = max(1, tk_cap // _LANE)
    best = 1
    for d in range(1, min(q, cap_q) + 1):
        if q % d == 0:
            best = d
    return best * _LANE


def _two_mlp_head_kernel(x_ref, w6_ref, b6_ref, w7_ref, b7_ref, o_ref, acc_ref):
    kk = pl.program_id(1)

    @pl.when(kk == 0)
    def _():
        acc_ref[...] = jnp.zeros_like(acc_ref)

    # fc6 partial product on the MXU, f32 accumulation: [TM, TK] @ [TK, Rp].
    acc_ref[...] += jnp.dot(x_ref[...], w6_ref[...],
                            preferred_element_type=jnp.float32)

    @pl.when(kk == pl.num_programs(1) - 1)
    def _():
        # fc6 epilogue in f32 (bias + ReLU).
        h = jnp.maximum(acc_ref[...] + b6_ref[...], 0.0)
        # fc7: [TM, Rp] @ [Rp, Rp], bf16 operands, f32 accumulate, bias + ReLU.
        y = jnp.dot(h.astype(w7_ref.dtype), w7_ref[...],
                    preferred_element_type=jnp.float32)
        y = jnp.maximum(y + b7_ref[...], 0.0)
        o_ref[...] = y.astype(o_ref.dtype)


def prepare_two_mlp_head_params(w6, b6, w7, b7, *, matmul_dtype=jnp.bfloat16,
                                tk_cap=None):
    """One-time weight prep (outside the hot path): transpose nn.Linear
    [out, in] weights to [in, out], pad to TPU-friendly multiples, cast the
    matmul operands to bf16, keep the biases in f32."""
    cfg = _device_config()
    if tk_cap is None:
        tk_cap = cfg["tk_max"]

    r, k = w6.shape
    assert w7.shape == (r, r) and b6.shape == (r,) and b7.shape == (r,)

    r_pad = _round_up(r, _LANE)
    k_pad = _round_up(k, _LANE)
    tk = _pick_tk(k_pad, tk_cap)   # divides k_pad exactly -> no K-pad of x tiles

    w6t = _pad2d(jnp.asarray(w6).T, (k_pad, r_pad)).astype(matmul_dtype)   # [Kp, Rp]
    w7t = _pad2d(jnp.asarray(w7).T, (r_pad, r_pad)).astype(matmul_dtype)   # [Rp, Rp]
    b6p = _pad2d(jnp.asarray(b6, jnp.float32).reshape(1, r), (1, r_pad))
    b7p = _pad2d(jnp.asarray(b7, jnp.float32).reshape(1, r), (1, r_pad))
    return dict(w6t=w6t, b6=b6p, w7t=w7t, b7=b7p,
                k=k, r=r, k_pad=k_pad, r_pad=r_pad, tk=tk,
                matmul_dtype=matmul_dtype)


def two_mlp_head(x, params, *, tm_cap=None):
    """x: [N, C, H, W] (or already-flat [N, K]).  Returns [N, R] in x's dtype."""
    cfg = _device_config()
    n = x.shape[0]
    x2d = x.reshape(n, -1)                     # flatten(start_dim=1)
    k = x2d.shape[1]
    assert k == params["k"], "input feature size does not match prepared weights"

    k_pad, r_pad, tk = params["k_pad"], params["r_pad"], params["tk"]
    r = params["r"]
    mm_dtype = params["matmul_dtype"]
    out_dtype = x2d.dtype

    # --- row tiling --------------------------------------------------------
    tm_max = _round_up(tm_cap, _ROW_PACK) if tm_cap is not None else cfg["tm_max"]
    n_min = _round_up(max(n, 1), _ROW_PACK)            # bf16 sublane packing
    if n_min > tm_max:
        tm = tm_max
        n_pad = _round_up(n_min, tm)
    elif cfg["cores"] > 1 and n_min >= 2 * _ROW_PACK:
        # Keep >= 2 row tiles so the "parallel" axis shards across TensorCores.
        tm = _round_up(_cdiv(n_min, cfg["cores"]), _ROW_PACK)
        n_pad = _round_up(n_min, tm)
    else:
        tm = n_min
        n_pad = n_min
    n_row_tiles = n_pad // tm
    grid = (n_row_tiles, k_pad // tk)

    # --- input prep: a no-op when N % 16 == 0, K % 128 == 0 and x is bf16 ---
    if x2d.dtype != mm_dtype:
        x2d = x2d.astype(mm_dtype)
    xp = _pad2d(x2d, (n_pad, k_pad))

    # --- VMEM budget / cost model -------------------------------------------
    in_bpe = jnp.dtype(mm_dtype).itemsize
    out_bpe = jnp.dtype(out_dtype).itemsize
    vmem_est = (2 * tm * tk * in_bpe              # x tiles (double buffered)
                + 2 * tk * r_pad * in_bpe         # w6 tiles (double buffered)
                + 2 * r_pad * r_pad * in_bpe      # w7 (worst case double buffered)
                + 4 * 2 * r_pad * 4               # biases
                + 2 * tm * r_pad * out_bpe        # out tiles
                + tm * r_pad * 4)                 # f32 accumulator scratch
    vmem_limit = int(min(cfg["vmem_cap"], max(32 << 20, int(1.5 * vmem_est))))

    flops = 2 * n_pad * k_pad * r_pad + 2 * n_pad * r_pad * r_pad
    bytes_accessed = (n_pad * k_pad * in_bpe                   # x read once
                      + n_row_tiles * k_pad * r_pad * in_bpe   # w6 re-read per row tile
                      + r_pad * r_pad * in_bpe                 # w7
                      + 2 * r_pad * 4                          # biases (f32)
                      + n_pad * r_pad * out_bpe)               # out

    def _run(single_buffer_resident):
        res_kw = {}
        if single_buffer_resident:
            # Resident operands (constant index_map) need only one VMEM buffer.
            res_kw = dict(pipeline_mode=pl.Buffered(1))
        in_specs = [
            pl.BlockSpec((tm, tk), lambda i, kk: (i, kk)),                  # x  (streamed)
            pl.BlockSpec((tk, r_pad), lambda i, kk: (kk, 0)),               # w6 (streamed)
            pl.BlockSpec((1, r_pad), lambda i, kk: (0, 0), **res_kw),       # b6 (resident)
            pl.BlockSpec((r_pad, r_pad), lambda i, kk: (0, 0), **res_kw),   # w7 (resident)
            pl.BlockSpec((1, r_pad), lambda i, kk: (0, 0), **res_kw),       # b7 (resident)
        ]
        return pl.pallas_call(
            _two_mlp_head_kernel,
            out_shape=jax.ShapeDtypeStruct((n_pad, r_pad), out_dtype),
            grid=grid,
            in_specs=in_specs,
            out_specs=pl.BlockSpec((tm, r_pad), lambda i, kk: (i, 0)),
            scratch_shapes=[pltpu.VMEM((tm, r_pad), jnp.float32)],   # fc6 f32 accumulator
            compiler_params=pltpu.CompilerParams(
                dimension_semantics=("parallel", "arbitrary"),
                vmem_limit_bytes=vmem_limit),
            cost_estimate=pl.CostEstimate(
                flops=flops, transcendentals=0, bytes_accessed=bytes_accessed),
        )(xp, params["w6t"], params["b6"], params["w7t"], params["b7"])

    try:
        out = _run(True)     # single-buffer b6 / w7 / b7
    except Exception:        # this jax/Mosaic combo rejects pl.Buffered(1): fall back
        out = _run(False)

    return out[:n, :r]


if __name__ == "__main__":
    R = 128

    key = jax.random.PRNGKey(0)
    kx, kx2, kw6, kb6, kw7, kb7 = jax.random.split(key, 6)

    # Small ROI-pooled feature shapes consistent with the module:
    # in_channels = C*H*W = 256, representation_size = 128.
    N, C, H, W = 16, 4, 8, 8
    K = C * H * W

    x = jax.random.normal(kx, (N, C, H, W), dtype=jnp.float32)
    # nn.Linear layout: weight is [out_features, in_features].
    w6 = jax.random.normal(kw6, (R, K), dtype=jnp.float32) * 0.02
    b6 = jax.random.normal(kb6, (R,), dtype=jnp.float32) * 0.01
    w7 = jax.random.normal(kw7, (R, R), dtype=jnp.float32) * 0.02
    b7 = jax.random.normal(kb7, (R,), dtype=jnp.float32) * 0.01

    def ref_fwd(xin):   # plain f32 JAX reference (same math as PyTorch forward)
        xf = xin.reshape(xin.shape[0], -1)
        h = jnp.maximum(xf @ w6.T + b6, 0.0)
        return jnp.maximum(h @ w7.T + b7, 0.0)

    # 1) Default tiling: single-block grid at this size; pad & cast of x fold away.
    params = prepare_two_mlp_head_params(w6, b6, w7, b7)      # one-time weight prep
    out = jax.block_until_ready(two_mlp_head(x, params))
    ref = ref_fwd(x)
    assert out.shape == (N, R)
    assert jnp.allclose(out, ref, atol=2e-2, rtol=2e-2), \
        float(jnp.max(jnp.abs(out - ref)))

    # 2) Force a real (rows x K) grid — 3 row tiles x 2 K-steps — to exercise the
    #    f32 accumulator and the pl.when init/finalize path.
    N2 = 40
    x2 = jax.random.normal(kx2, (N2, C, H, W), dtype=jnp.float32)
    params_t = prepare_two_mlp_head_params(w6, b6, w7, b7, tk_cap=128)
    out_t = jax.block_until_ready(two_mlp_head(x2, params_t, tm_cap=16))
    ref_t = ref_fwd(x2)
    assert out_t.shape == (N2, R)
    assert jnp.allclose(out_t, ref_t, atol=2e-2, rtol=2e-2), \
        float(jnp.max(jnp.abs(out_t - ref_t)))

    print("KERNEL_OK")
</pallas_src>

<mosaic_0001>
module attributes {stable_mosaic.version = 11 : i64} {
  func.func @_two_mlp_head_kernel(%arg0: i32, %arg1: i32, %arg2: memref<16x256xbf16, #tpu.memory_space<vmem>>, %arg3: memref<256x128xbf16, #tpu.memory_space<vmem>>, %arg4: memref<1x128xf32, #tpu.memory_space<vmem>>, %arg5: memref<128x128xbf16, #tpu.memory_space<vmem>>, %arg6: memref<1x128xf32, #tpu.memory_space<vmem>>, %arg7: memref<16x128xf32, #tpu.memory_space<vmem>>, %arg8: memref<16x128xf32, #tpu.memory_space<vmem>>) attributes {dimension_semantics = [#tpu.dimension_semantics<parallel>, #tpu.dimension_semantics<arbitrary>], iteration_bounds = array<i64: 1, 1>, scalar_prefetch = 0 : i64, scratch_operands = 1 : i64, tpu.core_type = #tpu.core_type<tc>, window_params = [{transform_indices = @transform_0, window_bounds = array<i64: 16, 256>}, {transform_indices = @transform_1, window_bounds = array<i64: 256, 128>}, {pipeline_mode = #tpu.pipeline_mode<synchronous>, transform_indices = @transform_2, window_bounds = array<i64: 1, 128>}, {pipeline_mode = #tpu.pipeline_mode<synchronous>, transform_indices = @transform_3, window_bounds = array<i64: 128, 128>}, {pipeline_mode = #tpu.pipeline_mode<synchronous>, transform_indices = @transform_4, window_bounds = array<i64: 1, 128>}, {transform_indices = @transform_5, window_bounds = array<i64: 16, 128>}]} {
    %c0_i32 = arith.constant 0 : i32
    %0 = arith.cmpi eq, %arg1, %c0_i32 : i32
    %1 = arith.extui %0 : i1 to i32
    %c0_i32_0 = arith.constant 0 : i32
    %2 = arith.cmpi ne, %1, %c0_i32_0 : i32
    scf.if %2 {
      %cst_10 = arith.constant 0.000000e+00 : f32
      %12 = vector.broadcast %cst_10 : f32 to vector<16x128xf32>
      %c0_11 = arith.constant 0 : index
      %c0_12 = arith.constant 0 : index
      %13 = vector.load %arg8[%c0_11, %c0_12] : memref<16x128xf32, #tpu.memory_space<vmem>>, vector<16x128xf32>
      tpu.vector_store %arg8[%c0_11, %c0_12], %12 {strides = array<i32>} : memref<16x128xf32, #tpu.memory_space<vmem>>, vector<16x128xf32>,
    } else {
    }
    %c0 = arith.constant 0 : index
    %c0_1 = arith.constant 0 : index
    %3 = vector.load %arg8[%c0, %c0_1] : memref<16x128xf32, #tpu.memory_space<vmem>>, vector<16x128xf32>
    %c0_2 = arith.constant 0 : index
    %c0_3 = arith.constant 0 : index
    %4 = vector.load %arg2[%c0_2, %c0_3] : memref<16x256xbf16, #tpu.memory_space<vmem>>, vector<16x256xbf16>
    %c0_4 = arith.constant 0 : index
    %c0_5 = arith.constant 0 : index
    %5 = vector.load %arg3[%c0_4, %c0_5] : memref<256x128xbf16, #tpu.memory_space<vmem>>, vector<256x128xbf16>
    %cst = arith.constant dense<0.000000e+00> : vector<16x128xf32>
    %6 = tpu.matmul %4, %5, %cst {dimension_numbers = #tpu.dot_dimension_numbers<[1], [0], [0], [1], [0, 0, 1, 1], [], []>} : vector<16x256xbf16>, vector<256x128xbf16>, vector<16x128xf32> -> vector<16x128xf32>
    %7 = arith.addf %3, %6 : vector<16x128xf32>
    %c0_6 = arith.constant 0 : index
    %c0_7 = arith.constant 0 : index
    %8 = vector.load %arg8[%c0_6, %c0_7] : memref<16x128xf32, #tpu.memory_space<vmem>>, vector<16x128xf32>
    tpu.vector_store %arg8[%c0_6, %c0_7], %7 {strides = array<i32>} : memref<16x128xf32, #tpu.memory_space<vmem>>, vector<16x128xf32>,
    %c0_i32_8 = arith.constant 0 : i32
    %9 = arith.cmpi eq, %arg1, %c0_i32_8 : i32
    %10 = arith.extui %9 : i1 to i32
    %c0_i32_9 = arith.constant 0 : i32
    %11 = arith.cmpi ne, %10, %c0_i32_9 : i32
    scf.if %11 {
      %c0_10 = arith.constant 0 : index
      %c0_11 = arith.constant 0 : index
      %12 = vector.load %arg8[%c0_10, %c0_11] : memref<16x128xf32, #tpu.memory_space<vmem>>, vector<16x128xf32>
      %c0_12 = arith.constant 0 : index
      %c0_13 = arith.constant 0 : index
      %13 = vector.load %arg4[%c0_12, %c0_13] : memref<1x128xf32, #tpu.memory_space<vmem>>, vector<1x128xf32>
      %14 = vector.broadcast %13 : vector<1x128xf32> to vector<16x128xf32>
      %15 = arith.addf %12, %14 : vector<16x128xf32>
      %cst_14 = arith.constant 0.000000e+00 : f32
      %16 = vector.broadcast %cst_14 : f32 to vector<16x128xf32>
      %17 = arith.maximumf %15, %16 : vector<16x128xf32>
      %18 = arith.truncf %17 : vector<16x128xf32> to vector<16x128xbf16>
      %c0_15 = arith.constant 0 : index
      %c0_16 = arith.constant 0 : index
      %19 = vector.load %arg5[%c0_15, %c0_16] : memref<128x128xbf16, #tpu.memory_space<vmem>>, vector<128x128xbf16>
      %cst_17 = arith.constant dense<0.000000e+00> : vector<16x128xf32>
      %20 = tpu.matmul %18, %19, %cst_17 {dimension_numbers = #tpu.dot_dimension_numbers<[1], [0], [0], [1], [0, 0, 1, 1], [], []>} : vector<16x128xbf16>, vector<128x128xbf16>, vector<16x128xf32> -> vector<16x128xf32>
      %c0_18 = arith.constant 0 : index
      %c0_19 = arith.constant 0 : index
      %21 = vector.load %arg6[%c0_18, %c0_19] : memref<1x128xf32, #tpu.memory_space<vmem>>, vector<1x128xf32>
      %22 = vector.broadcast %21 : vector<1x128xf32> to vector<16x128xf32>
      %23 = arith.addf %20, %22 : vector<16x128xf32>
      %cst_20 = arith.constant 0.000000e+00 : f32
      %24 = vector.broadcast %cst_20 : f32 to vector<16x128xf32>
      %25 = arith.maximumf %23, %24 : vector<16x128xf32>
      %c0_21 = arith.constant 0 : index
      %c0_22 = arith.constant 0 : index
      %26 = vector.load %arg7[%c0_21, %c0_22] : memref<16x128xf32, #tpu.memory_space<vmem>>, vector<16x128xf32>
      tpu.vector_store %arg7[%c0_21, %c0_22], %25 {strides = array<i32>} : memref<16x128xf32, #tpu.memory_space<vmem>>, vector<16x128xf32>,
    } else {
    }
    return
  }
  func.func @transform_0(%arg0: i32, %arg1: i32) -> (i32, i32) {
    %c0_i32 = arith.constant 0 : i32
    return %arg0, %arg1 : i32, i32
  }
  func.func @transform_1(%arg0: i32, %arg1: i32) -> (i32, i32) {
    %c0_i32 = arith.constant 0 : i32
    %c0_i32_0 = arith.constant 0 : i32
    return %arg1, %c0_i32 : i32, i32
  }
  func.func @transform_2(%arg0: i32, %arg1: i32) -> (i32, i32) {
    %c0_i32 = arith.constant 0 : i32
    %c0_i32_0 = arith.constant 0 : i32
    %c0_i32_1 = arith.constant 0 : i32
    return %c0_i32, %c0_i32_0 : i32, i32
  }
  func.func @transform_3(%arg0: i32, %arg1: i32) -> (i32, i32) {
    %c0_i32 = arith.constant 0 : i32
    %c0_i32_0 = arith.constant 0 : i32
    %c0_i32_1 = arith.constant 0 : i32
    return %c0_i32, %c0_i32_0 : i32, i32
  }
  func.func @transform_4(%arg0: i32, %arg1: i32) -> (i32, i32) {
    %c0_i32 = arith.constant 0 : i32
    %c0_i32_0 = arith.constant 0 : i32
    %c0_i32_1 = arith.constant 0 : i32
    return %c0_i32, %c0_i32_0 : i32, i32
  }
  func.func @transform_5(%arg0: i32, %arg1: i32) -> (i32, i32) {
    %c0_i32 = arith.constant 0 : i32
    %c0_i32_0 = arith.constant 0 : i32
    return %arg0, %c0_i32 : i32, i32
  }
}

module attributes {stable_mosaic.version = 11 : i64} {
  func.func @_two_mlp_head_kernel(%arg0: i32, %arg1: i32, %arg2: memref<16x256xbf16, #tpu.memory_space<vmem>>, %arg3: memref<256x128xbf16, #tpu.memory_space<vmem>>, %arg4: memref<1x128xf32, #tpu.memory_space<vmem>>, %arg5: memref<128x128xbf16, #tpu.memory_space<vmem>>, %arg6: memref<1x128xf32, #tpu.memory_space<vmem>>, %arg7: memref<16x128xf32, #tpu.memory_space<vmem>>, %arg8: memref<16x128xf32, #tpu.memory_space<vmem>>) attributes {dimension_semantics = [#tpu.dimension_semantics<parallel>, #tpu.dimension_semantics<arbitrary>], iteration_bounds = array<i64: 1, 1>, scalar_prefetch = 0 : i64, scratch_operands = 1 : i64, tpu.core_type = #tpu.core_type<tc>, window_params = [{transform_indices = @transform_0, window_bounds = array<i64: 16, 256>}, {transform_indices = @transform_1, window_bounds = array<i64: 256, 128>}, {pipeline_mode = #tpu.pipeline_mode<synchronous>, transform_indices = @transform_2, window_bounds = array<i64: 1, 128>}, {pipeline_mode = #tpu.pipeline_mode<synchronous>, transform_indices = @transform_3, window_bounds = array<i64: 128, 128>}, {pipeline_mode = #tpu.pipeline_mode<synchronous>, transform_indices = @transform_4, window_bounds = array<i64: 1, 128>}, {transform_indices = @transform_5, window_bounds = array<i64: 16, 128>}]} {
    %c0_i32 = arith.constant 0 : i32
    %0 = arith.cmpi eq, %arg1, %c0_i32 : i32
    %1 = arith.extui %0 : i1 to i32
    %c0_i32_0 = arith.constant 0 : i32
    %2 = arith.cmpi ne, %1, %c0_i32_0 : i32
    scf.if %2 {
      %cst_10 = arith.constant 0.000000e+00 : f32
      %12 = vector.broadcast %cst_10 : f32 to vector<16x128xf32>
      %c0_11 = arith.constant 0 : index
      %c0_12 = arith.constant 0 : index
      %13 = vector.load %arg8[%c0_11, %c0_12] : memref<16x128xf32, #tpu.memory_space<vmem>>, vector<16x128xf32>
      tpu.vector_store %arg8[%c0_11, %c0_12], %12 {strides = array<i32>} : memref<16x128xf32, #tpu.memory_space<vmem>>, vector<16x128xf32>,
    } else {
    }
    %c0 = arith.constant 0 : index
    %c0_1 = arith.constant 0 : index
    %3 = vector.load %arg8[%c0, %c0_1] : memref<16x128xf32, #tpu.memory_space<vmem>>, vector<16x128xf32>
    %c0_2 = arith.constant 0 : index
    %c0_3 = arith.constant 0 : index
    %4 = vector.load %arg2[%c0_2, %c0_3] : memref<16x256xbf16, #tpu.memory_space<vmem>>, vector<16x256xbf16>
    %c0_4 = arith.constant 0 : index
    %c0_5 = arith.constant 0 : index
    %5 = vector.load %arg3[%c0_4, %c0_5] : memref<256x128xbf16, #tpu.memory_space<vmem>>, vector<256x128xbf16>
    %cst = arith.constant dense<0.000000e+00> : vector<16x128xf32>
    %6 = tpu.matmul %4, %5, %cst {dimension_numbers = #tpu.dot_dimension_numbers<[1], [0], [0], [1], [0, 0, 1, 1], [], []>} : vector<16x256xbf16>, vector<256x128xbf16>, vector<16x128xf32> -> vector<16x128xf32>
    %7 = arith.addf %3, %6 : vector<16x128xf32>
    %c0_6 = arith.constant 0 : index
    %c0_7 = arith.constant 0 : index
    %8 = vector.load %arg8[%c0_6, %c0_7] : memref<16x128xf32, #tpu.memory_space<vmem>>, vector<16x128xf32>
    tpu.vector_store %arg8[%c0_6, %c0_7], %7 {strides = array<i32>} : memref<16x128xf32, #tpu.memory_space<vmem>>, vector<16x128xf32>,
    %c0_i32_8 = arith.constant 0 : i32
    %9 = arith.cmpi eq, %arg1, %c0_i32_8 : i32
    %10 = arith.extui %9 : i1 to i32
    %c0_i32_9 = arith.constant 0 : i32
    %11 = arith.cmpi ne, %10, %c0_i32_9 : i32
    scf.if %11 {
      %c0_10 = arith.constant 0 : index
      %c0_11 = arith.constant 0 : index
      %12 = vector.load %arg8[%c0_10, %c0_11] : memref<16x128xf32, #tpu.memory_space<vmem>>, vector<16x128xf32>
      %c0_12 = arith.constant 0 : index
      %c0_13 = arith.constant 0 : index
      %13 = vector.load %arg4[%c0_12, %c0_13] : memref<1x128xf32, #tpu.memory_space<vmem>>, vector<1x128xf32>
      %14 = vector.broadcast %13 : vector<1x128xf32> to vector<16x128xf32>
      %15 = arith.addf %12, %14 : vector<16x128xf32>
      %cst_14 = arith.constant 0.000000e+00 : f32
      %16 = vector.broadcast %cst_14 : f32 to vector<16x128xf32>
      %17 = arith.maximumf %15, %16 : vector<16x128xf32>
      %18 = arith.truncf %17 : vector<16x128xf32> to vector<16x128xbf16>
      %c0_15 = arith.constant 0 : index
      %c0_16 = arith.constant 0 : index
      %19 = vector.load %arg5[%c0_15, %c0_16] : memref<128x128xbf16, #tpu.memory_space<vmem>>, vector<128x128xbf16>
      %cst_17 = arith.constant dense<0.000000e+00> : vector<16x128xf32>
      %20 = tpu.matmul %18, %19, %cst_17 {dimension_numbers = #tpu.dot_dimension_numbers<[1], [0], [0], [1], [0, 0, 1, 1], [], []>} : vector<16x128xbf16>, vector<128x128xbf16>, vector<16x128xf32> -> vector<16x128xf32>
      %c0_18 = arith.constant 0 : index
      %c0_19 = arith.constant 0 : index
      %21 = vector.load %arg6[%c0_18, %c0_19] : memref<1x128xf32, #tpu.memory_space<vmem>>, vector<1x128xf32>
      %22 = vector.broadcast %21 : vector<1x128xf32> to vector<16x128xf32>
      %23 = arith.addf %20, %22 : vector<16x128xf32>
      %cst_20 = arith.constant 0.000000e+00 : f32
      %24 = vector.broadcast %cst_20 : f32 to vector<16x128xf32>
      %25 = arith.maximumf %23, %24 : vector<16x128xf32>
      %c0_21 = arith.constant 0 : index
      %c0_22 = arith.constant 0 : index
      %26 = vector.load %arg7[%c0_21, %c0_22] : memref<16x128xf32, #tpu.memory_space<vmem>>, vector<16x128xf32>
      tpu.vector_store %arg7[%c0_21, %c0_22], %25 {strides = array<i32>} : memref<16x128xf32, #tpu.memory_space<vmem>>, vector<16x128xf32>,
    } else {
    }
    return
  }
  func.func @transform_0(%arg0: i32, %arg1: i32) -> (i32, i32) {
    %c0_i32 = arith.constant 0 : i32
    return %arg0, %arg1 : i32, i32
  }
  func.func @transform_1(%arg0: i32, %arg1: i32) -> (i32, i32) {
    %c0_i32 = arith.constant 0 : i32
    %c0_i32_0 = arith.constant 0 : i32
    return %arg1, %c0_i32 : i32, i32
  }
  func.func @transform_2(%arg0: i32, %arg1: i32) -> (i32, i32) {
    %c0_i32 = arith.constant 0 : i32
    %c0_i32_0 = arith.constant 0 : i32
    %c0_i32_1 = arith.constant 0 : i32
    return %c0_i32, %c0_i32_0 : i32, i32
  }
  func.func @transform_3(%arg0: i32, %arg1: i32) -> (i32, i32) {
    %c0_i32 = arith.constant 0 : i32
    %c0_i32_0 = arith.constant 0 : i32
    %c0_i32_1 = arith.constant 0 : i32
    return %c0_i32, %c0_i32_0 : i32, i32
  }
  func.func @transform_4(%arg0: i32, %arg1: i32) -> (i32, i32) {
    %c0_i32 = arith.constant 0 : i32
    %c0_i32_0 = arith.constant 0 : i32
    %c0_i32_1 = arith.constant 0 : i32
    return %c0_i32, %c0_i32_0 : i32, i32
  }
  func.func @transform_5(%arg0: i32, %arg1: i32) -> (i32, i32) {
    %c0_i32 = arith.constant 0 : i32
    %c0_i32_0 = arith.constant 0 : i32
    return %arg0, %c0_i32 : i32, i32
  }
}

</mosaic_0001>

<bundles_post_ra>
// kernel: tpu_custom_call.1
= control target key start
LH: loop header
LB: loop body
LE: loop exit
PB: predicated region body
PF: predicated region fallthrough
CT: control target
= control target key end

     0   :  { %10 = vsyncpa [#allocation4], 0  ;;  %s673_s0 = inlined_call_operand.hbm [shape: bf16[16,256], index: 0, kind: input, shape index: {}]   ;;  %s674_s1 = inlined_call_operand.hbm [shape: bf16[256,128], index: 1, kind: input, shape index: {}]   ;;  %s675_s2 = inlined_call_operand.vmem [shape: f32[1,128], index: 2, kind: input, shape index: {}]   ;;  %s676_s3 = inlined_call_operand.hbm [shape: bf16[128,128], index: 3, kind: input, shape index: {}]   ;;  %s677_s4 = inlined_call_operand.vmem [shape: f32[1,128], index: 4, kind: input, shape index: {}]   ;;  %s678_s5 = inlined_call_operand.hbm [shape: f32[16,128], index: 5, kind: output, shape index: {}]  }
   0x1   :  { %11 = vsyncpa [#allocation7], 0 }
   0x2   :  { %12 = vsyncpa [#allocation5], 0  ;;  %s609_s18 = smov [#allocation6]  }
   0x3   :  { %s30_s19 = sshll.u32 %s609_s18, 4  ;;  %s31_s19 = int_to_ptr.vmem [resolvable:$true] %s30_s19 }
   0x4   :  { %s531_s20 = scalar_lea.vmem %s31_s19, 2048  ;;  %p536_p1 = scmp.lt.s32.totalorder %s31_s19, %s31_s19 }
   0x5   :  { %p532_p0 = scmp.ne.s32.totalorder %s31_s19, %s531_s20  ;;  %p537_p2 = scmp.lt.s32.totalorder %s531_s20, %s531_s20 }
   0x7   :  { %p538_p3 = por %p537_p2, %p536_p1 }
   0x9   :  { %p539_p4 = pnand %p538_p3, %p532_p0 }
   0xb   :  { %542 = shalt.err (!%p539_p4)
}
   0xc   :  { %s610_s21 = smov 64   ;;  %s611_s22 = smov 4  }
   0xd   :  { %36 = dma.hbm_to_vmem [thread:$0]  %s674_s1, 2048, %s31_s19, [#allocation7], %s610_s21, %s610_s21, %s611_s22  }
   0xe   :  { %s612_s25 = smov [#allocation3]  }
   0xf   :  { %s18_s26 = sshll.u32 %s612_s25, 4  ;;  %s19_s26 = int_to_ptr.vmem [resolvable:$true] %s18_s26 }
  0x10   :  { %s551_s27 = scalar_lea.vmem %s19_s26, 256  ;;  %p556_p6 = scmp.lt.s32.totalorder %s19_s26, %s19_s26 }
  0x11   :  { %p552_p5 = scmp.ne.s32.totalorder %s19_s26, %s551_s27  ;;  %p557_p7 = scmp.lt.s32.totalorder %s551_s27, %s551_s27 }
  0x13   :  { %p558_p8 = por %p557_p7, %p556_p6 }
  0x15   :  { %p559_p9 = pnand %p558_p8, %p552_p5 }
  0x17   :  { %562 = shalt.err (!%p559_p9)
}
  0x18   :  { %s613_s28 = smov 128   ;;  %s614_s29 = smov 8  }
  0x19   :  { %24 = dma.hbm_to_vmem [thread:$0]  %s673_s0, 256, %s19_s26, [#allocation4], %s613_s28, %s613_s28, %s614_s29  }
  0x1a   :  { %s615_s1 = smov [#allocation8]  }
  0x1b   :  { %s44_s7 = sshll.u32 %s615_s1, 4  ;;  %s45_s7 = int_to_ptr.vmem [resolvable:$true] %s44_s7 }
  0x1c   :  { %s571_s8 = scalar_lea.vmem %s45_s7, 1024  ;;  %p576_p11 = scmp.lt.s32.totalorder %s45_s7, %s45_s7 }
  0x1d   :  { %p572_p10 = scmp.ne.s32.totalorder %s45_s7, %s571_s8  ;;  %p577_p12 = scmp.lt.s32.totalorder %s571_s8, %s571_s8 }
  0x1f   :  { %p578_p13 = por %p577_p12, %p576_p11 }
  0x21   :  { %p579_p0 = pnand %p578_p13, %p572_p10 }
  0x23   :  { %582 = shalt.err (!%p579_p0)
}
  0x24   :  { %50 = dma.hbm_to_vmem [thread:$0]  %s676_s3, 1024, %s45_s7, [#allocation7], %s610_s21, %s610_s21, %s611_s22  }
  0x25   :  { %603 = dma.done.wait [#allocation4], 256  }
  0x26   :  { %604 = vsyncadd [#allocation4], 4294967040 }
  0x27   :  { %605 = dma.done.wait [#allocation7], 3072  }
  0x28   :  { %606 = vsyncadd [#allocation7], 4294964224  ;;  %v616_v0 = vmov 0.0   ;;  %v496_v1 = vld [vmem:[#allocation6 + $0x78] sm:$0xff]   ;;  %v498_v3 = vld [vmem:[#allocation6 + $0x70] sm:$0xff]   ;;  %vm617_vm0 = vmmov 0  }
  0x29   :  { %466 = vmatprep.subr.bf16.mxu1 %v616_v0  ;;  %v497_v2 = vld [vmem:[#allocation6 + $0x38] sm:$0xff]   ;;  %435 = vmatprep.subr.bf16.mxu0 %v496_v1  ;;  %v499_v4 = vld [vmem:[#allocation6 + $0x30] sm:$0xff]   ;;  %v500_v5 = vld [vmem:[#allocation6 + $0x68] sm:$0xff]   ;;  %s618_s13 = smov [#allocation9]  }
  0x2a   :  { %436 = vmatpush3.bf16.msra.mxu0 %v497_v2  ;;  %v501_v6 = vld [vmem:[#allocation6 + $0x28] sm:$0xff]   ;;  %v502_v7 = vld [vmem:[#allocation6 + $0x60] sm:$0xff]   ;;  %v504_v9 = vld [vmem:[#allocation6 + $0x58] sm:$0xff]   ;;  %482 = vmatprep.mubr.msk.bf16.mxu1 %vm617_vm0, %v616_v0 }
  0x2b   :  { %437 = vmatprep.subr.bf16.mxu0 %v498_v3  ;;  %v503_v8 = vld [vmem:[#allocation6 + $0x20] sm:$0xff]   ;;  %v505_v10 = vld [vmem:[#allocation6 + $0x18] sm:$0xff]   ;;  %v506_v11 = vld [vmem:[#allocation6 + $0x50] sm:$0xff]  }
  0x2c   :  { %v507_v12 = vld [vmem:[#allocation6 + $0x10] sm:$0xff]   ;;  %v515_v14 = vld [vmem:[#allocation8 + $0x38] sm:$0xff]   ;;  %v508_v15 = vld [vmem:[#allocation6 + $0x48] sm:$0xff]  }
  0x2d   :  { %v514_v13 = vld [vmem:[#allocation3 + $0x4] ss:$8 sps:$4 sm:$0xff]   ;;  %467 = vmatpush3.bf16.msra.mxu1 %v515_v14  ;;  %v509_v17 = vld [vmem:[#allocation6 + $0x8] sm:$0xff]   ;;  %v510_v18 = vld [vmem:[#allocation6 + $0x40] sm:$0xff]  }
  0x2e   :  { %438 = vmatpush3.bf16.msra.mxu0 %v499_v4  ;;  %243 = vmatprep.mubr.bf16.mxu0 %v514_v13  ;;  %v516_v16 = vld [vmem:[#allocation8 + $0x30] sm:$0xff]   ;;  %v517_v19 = vld [vmem:[#allocation8 + $0x28] sm:$0xff]   ;;  %v511_v20 = vld [vmem:[#allocation6] sm:$0xff]  }
  0x2f   :  { %439 = vmatprep.subr.bf16.mxu0 %v500_v5  ;;  %468 = vmatprep.subr.bf16.mxu1 %v616_v0  ;;  %v518_v21 = vld [vmem:[#allocation8 + $0x20] sm:$0xff]   ;;  %v512_v22 = vld [vmem:[#allocation3] ss:$8 sps:$4 sm:$0xff]   ;;  %v521_v25 = vld [vmem:[#allocation8 + $0x8] sm:$0xff]  }
  0x30   :  { %v519_v23 = vld [vmem:[#allocation8 + $0x18] sm:$0xff]   ;;  %v520_v24 = vld [vmem:[#allocation8 + $0x10] sm:$0xff]   ;;  %v522_v26 = vld [vmem:[#allocation8] sm:$0xff]  }
  0x31   :  { %469 = vmatpush3.bf16.msra.mxu1 %v516_v16  ;;  %v425_v30 = vld [vmem:[%s675_s2] ss:$0 sm:$0xff]  ;;  %s394_s2 = sshll.u32 %s618_s13, 4  ;;  %s395_s2 = int_to_ptr.vmem [resolvable:$true] %s394_s2 }
  0x32   :  { %440 = vmatpush3.bf16.msra.mxu0 %v501_v6  ;;  %470 = vmatprep.subr.bf16.mxu1 %v616_v0  ;;  %v426_v39 = vld [vmem:[%s677_s4] ss:$0 sm:$0xff]  ;;  %s583_s14 = scalar_lea.vmem %s395_s2, 256  ;;  %p588_p2 = scmp.lt.s32.totalorder %s395_s2, %s395_s2 }
  0x33   :  { %441 = vmatprep.subr.bf16.mxu0 %v502_v7  ;;  %p584_p1 = scmp.ne.s32.totalorder %s395_s2, %s583_s14  ;;  %p589_p3 = scmp.lt.s32.totalorder %s583_s14, %s583_s14 }
  0x35   :  { %471 = vmatpush3.bf16.msra.mxu1 %v517_v19  ;;  %p590_p4 = por %p589_p3, %p588_p2 }
  0x36   :  { %442 = vmatpush3.bf16.msra.mxu0 %v503_v8  ;;  %472 = vmatprep.subr.bf16.mxu1 %v616_v0 }
  0x37   :  { %443 = vmatprep.subr.bf16.mxu0 %v504_v9  ;;  %p591_p5 = pnand %p590_p4, %p584_p1 }
  0x39   :  { %473 = vmatpush3.bf16.msra.mxu1 %v518_v21 }
  0x3a   :  { %444 = vmatpush3.bf16.msra.mxu0 %v505_v10  ;;  %474 = vmatprep.subr.bf16.mxu1 %v616_v0 }
  0x3b   :  { %445 = vmatprep.subr.bf16.mxu0 %v506_v11 }
  0x3d   :  { %475 = vmatpush3.bf16.msra.mxu1 %v519_v23 }
  0x3e   :  { %446 = vmatpush3.bf16.msra.mxu0 %v507_v12  ;;  %476 = vmatprep.subr.bf16.mxu1 %v616_v0 }
  0x3f   :  { %447 = vmatprep.subr.bf16.mxu0 %v508_v15 }
  0x41   :  { %477 = vmatpush3.bf16.msra.mxu1 %v520_v24 }
  0x42   :  { %448 = vmatpush3.bf16.msra.mxu0 %v509_v17  ;;  %478 = vmatprep.subr.bf16.mxu1 %v616_v0 }
  0x43   :  { %449 = vmatprep.subr.bf16.mxu0 %v510_v18 }
  0x45   :  { %479 = vmatpush3.bf16.msra.mxu1 %v521_v25 }
  0x46   :  { %450 = vmatpush3.bf16.msra.mxu0 %v511_v20  ;;  %480 = vmatprep.subr.bf16.mxu1 %v616_v0 }
  0x49   :  { %244 = vmatmul.mubr.bf16.vlgmr.msra.gmra.mxu0 %v512_v22  ;;  %481 = vmatpush3.bf16.msra.mxu1 %v522_v26 }
 0x109   :  { %v451_v27 = vpop.f32.mrf.mxu0 }
 0x10b   :  { %v452_v28 = vpop.f32.mrf.mxu0 }
 0x10c   :  { %v453_v29 = vadd.f32 %v452_v28, %v451_v27 }
 0x10d   :  { %v454_v31 = vpop.f32.mrf.mxu0 }
 0x10e   :  { %v268_v33 = vadd.f32 %v453_v29, %v425_v30 }
 0x10f   :  { %v455_v32 = vpop.f32.mrf.mxu0 }
 0x110   :  { %v456_v34 = vadd.f32 %v455_v32, %v454_v31  ;;  %v270_v36 = vmax.f32 %v268_v33, 0.0 }
 0x112   :  { %v269_v35 = vadd.f32 %v456_v34, %v425_v30 }
 0x114   :  { %v271_v37 = vmax.f32 %v269_v35, 0.0 }
 0x116   :  { %v272_v38 = vpack.c.bf16 %v271_v37, %v270_v36 }
 0x118   :  { %483 = vmatmul.mubr.bf16.vlgmr.msra.gmra.mxu1 %v272_v38 }
 0x1d8   :  { %v378_v40 = vpop.f32.mrf.mxu1 }
 0x1d9   :  { %v379_v41 = vadd.f32 %v426_v39, %v378_v40 }
 0x1da   :  { %v484_v42 = vpop.f32.mrf.mxu1 }
 0x1db   :  { %v385_v43 = vmax.f32 %v379_v41, 0.0 }
 0x1dc   :  { %v381_v44 = vpop.f32.mrf.mxu1 }
 0x1dd   :  { %387 = vst [vmem:[#allocation9] sm:$0xff] %v385_v43  ;;  %v382_v45 = vadd.f32 %v426_v39, %v381_v44 }
 0x1de   :  { %v485_v46 = vpop.f32.mrf.mxu1 }
 0x1df   :  { %v386_v47 = vmax.f32 %v382_v45, 0.0 }
 0x1e1   :  { %388 = vst [vmem:[#allocation9 + $0x8] sm:$0xff] %v386_v47 }
 0x1e2   :  { %594 = shalt.err (!%p591_p5)
}
 0x1e3   :  { %400 = dma.vmem_to_hbm [thread:$0]  %s395_s2, 256, %s678_s5, [#allocation5], %s613_s28, %s613_s28, %s614_s29  }
 0x1e4   :  { %607 = dma.done.wait [#allocation5], 256  }
 0x1e5   :  { %608 = vsyncadd [#allocation5], 4294967040 }
 0x1e6   :  { %404 = vsyncpa [#allocation4], 1 }
 0x1e7   :  { %405 = vsyncpa [#allocation7], 1 }
 0x1e8   :  { %406 = vsyncpa [#allocation5], 1 }

// kernel: tpu_custom_call.1
= control target key start
LH: loop header
LB: loop body
LE: loop exit
PB: predicated region body
PF: predicated region fallthrough
CT: control target
= control target key end

     0   :  { %10 = vsyncpa [#allocation4], 0  ;;  %s673_s0 = inlined_call_operand.hbm [shape: bf16[16,256], index: 0, kind: input, shape index: {}]   ;;  %s674_s1 = inlined_call_operand.hbm [shape: bf16[256,128], index: 1, kind: input, shape index: {}]   ;;  %s675_s2 = inlined_call_operand.vmem [shape: f32[1,128], index: 2, kind: input, shape index: {}]   ;;  %s676_s3 = inlined_call_operand.hbm [shape: bf16[128,128], index: 3, kind: input, shape index: {}]   ;;  %s677_s4 = inlined_call_operand.vmem [shape: f32[1,128], index: 4, kind: input, shape index: {}]   ;;  %s678_s5 = inlined_call_operand.hbm [shape: f32[16,128], index: 5, kind: output, shape index: {}]  }
   0x1   :  { %11 = vsyncpa [#allocation7], 0 }
   0x2   :  { %12 = vsyncpa [#allocation5], 0  ;;  %s609_s18 = smov [#allocation6]  }
   0x3   :  { %s30_s19 = sshll.u32 %s609_s18, 4  ;;  %s31_s19 = int_to_ptr.vmem [resolvable:$true] %s30_s19 }
   0x4   :  { %s531_s20 = scalar_lea.vmem %s31_s19, 2048  ;;  %p536_p1 = scmp.lt.s32.totalorder %s31_s19, %s31_s19 }
   0x5   :  { %p532_p0 = scmp.ne.s32.totalorder %s31_s19, %s531_s20  ;;  %p537_p2 = scmp.lt.s32.totalorder %s531_s20, %s531_s20 }
   0x7   :  { %p538_p3 = por %p537_p2, %p536_p1 }
   0x9   :  { %p539_p4 = pnand %p538_p3, %p532_p0 }
   0xb   :  { %542 = shalt.err (!%p539_p4)
}
   0xc   :  { %s610_s21 = smov 64   ;;  %s611_s22 = smov 4  }
   0xd   :  { %36 = dma.hbm_to_vmem [thread:$0]  %s674_s1, 2048, %s31_s19, [#allocation7], %s610_s21, %s610_s21, %s611_s22  }
   0xe   :  { %s612_s25 = smov [#allocation3]  }
   0xf   :  { %s18_s26 = sshll.u32 %s612_s25, 4  ;;  %s19_s26 = int_to_ptr.vmem [resolvable:$true] %s18_s26 }
  0x10   :  { %s551_s27 = scalar_lea.vmem %s19_s26, 256  ;;  %p556_p6 = scmp.lt.s32.totalorder %s19_s26, %s19_s26 }
  0x11   :  { %p552_p5 = scmp.ne.s32.totalorder %s19_s26, %s551_s27  ;;  %p557_p7 = scmp.lt.s32.totalorder %s551_s27, %s551_s27 }
  0x13   :  { %p558_p8 = por %p557_p7, %p556_p6 }
  0x15   :  { %p559_p9 = pnand %p558_p8, %p552_p5 }
  0x17   :  { %562 = shalt.err (!%p559_p9)
}
  0x18   :  { %s613_s28 = smov 128   ;;  %s614_s29 = smov 8  }
  0x19   :  { %24 = dma.hbm_to_vmem [thread:$0]  %s673_s0, 256, %s19_s26, [#allocation4], %s613_s28, %s613_s28, %s614_s29  }
  0x1a   :  { %s615_s1 = smov [#allocation8]  }
  0x1b   :  { %s44_s7 = sshll.u32 %s615_s1, 4  ;;  %s45_s7 = int_to_ptr.vmem [resolvable:$true] %s44_s7 }
  0x1c   :  { %s571_s8 = scalar_lea.vmem %s45_s7, 1024  ;;  %p576_p11 = scmp.lt.s32.totalorder %s45_s7, %s45_s7 }
  0x1d   :  { %p572_p10 = scmp.ne.s32.totalorder %s45_s7, %s571_s8  ;;  %p577_p12 = scmp.lt.s32.totalorder %s571_s8, %s571_s8 }
  0x1f   :  { %p578_p13 = por %p577_p12, %p576_p11 }
  0x21   :  { %p579_p0 = pnand %p578_p13, %p572_p10 }
  0x23   :  { %582 = shalt.err (!%p579_p0)
}
  0x24   :  { %50 = dma.hbm_to_vmem [thread:$0]  %s676_s3, 1024, %s45_s7, [#allocation7], %s610_s21, %s610_s21, %s611_s22  }
  0x25   :  { %603 = dma.done.wait [#allocation4], 256  }
  0x26   :  { %604 = vsyncadd [#allocation4], 4294967040 }
  0x27   :  { %605 = dma.done.wait [#allocation7], 3072  }
  0x28   :  { %606 = vsyncadd [#allocation7], 4294964224  ;;  %v616_v0 = vmov 0.0   ;;  %v496_v1 = vld [vmem:[#allocation6 + $0x78] sm:$0xff]   ;;  %v498_v3 = vld [vmem:[#allocation6 + $0x70] sm:$0xff]   ;;  %vm617_vm0 = vmmov 0  }
  0x29   :  { %466 = vmatprep.subr.bf16.mxu1 %v616_v0  ;;  %v497_v2 = vld [vmem:[#allocation6 + $0x38] sm:$0xff]   ;;  %435 = vmatprep.subr.bf16.mxu0 %v496_v1  ;;  %v499_v4 = vld [vmem:[#allocation6 + $0x30] sm:$0xff]   ;;  %v500_v5 = vld [vmem:[#allocation6 + $0x68] sm:$0xff]   ;;  %s618_s13 = smov [#allocation9]  }
  0x2a   :  { %436 = vmatpush3.bf16.msra.mxu0 %v497_v2  ;;  %v501_v6 = vld [vmem:[#allocation6 + $0x28] sm:$0xff]   ;;  %v502_v7 = vld [vmem:[#allocation6 + $0x60] sm:$0xff]   ;;  %v504_v9 = vld [vmem:[#allocation6 + $0x58] sm:$0xff]   ;;  %482 = vmatprep.mubr.msk.bf16.mxu1 %vm617_vm0, %v616_v0 }
  0x2b   :  { %437 = vmatprep.subr.bf16.mxu0 %v498_v3  ;;  %v503_v8 = vld [vmem:[#allocation6 + $0x20] sm:$0xff]   ;;  %v505_v10 = vld [vmem:[#allocation6 + $0x18] sm:$0xff]   ;;  %v506_v11 = vld [vmem:[#allocation6 + $0x50] sm:$0xff]  }
  0x2c   :  { %v507_v12 = vld [vmem:[#allocation6 + $0x10] sm:$0xff]   ;;  %v515_v14 = vld [vmem:[#allocation8 + $0x38] sm:$0xff]   ;;  %v508_v15 = vld [vmem:[#allocation6 + $0x48] sm:$0xff]  }
  0x2d   :  { %v514_v13 = vld [vmem:[#allocation3 + $0x4] ss:$8 sps:$4 sm:$0xff]   ;;  %467 = vmatpush3.bf16.msra.mxu1 %v515_v14  ;;  %v509_v17 = vld [vmem:[#allocation6 + $0x8] sm:$0xff]   ;;  %v510_v18 = vld [vmem:[#allocation6 + $0x40] sm:$0xff]  }
  0x2e   :  { %438 = vmatpush3.bf16.msra.mxu0 %v499_v4  ;;  %243 = vmatprep.mubr.bf16.mxu0 %v514_v13  ;;  %v516_v16 = vld [vmem:[#allocation8 + $0x30] sm:$0xff]   ;;  %v517_v19 = vld [vmem:[#allocation8 + $0x28] sm:$0xff]   ;;  %v511_v20 = vld [vmem:[#allocation6] sm:$0xff]  }
  0x2f   :  { %439 = vmatprep.subr.bf16.mxu0 %v500_v5  ;;  %468 = vmatprep.subr.bf16.mxu1 %v616_v0  ;;  %v518_v21 = vld [vmem:[#allocation8 + $0x20] sm:$0xff]   ;;  %v512_v22 = vld [vmem:[#allocation3] ss:$8 sps:$4 sm:$0xff]   ;;  %v521_v25 = vld [vmem:[#allocation8 + $0x8] sm:$0xff]  }
  0x30   :  { %v519_v23 = vld [vmem:[#allocation8 + $0x18] sm:$0xff]   ;;  %v520_v24 = vld [vmem:[#allocation8 + $0x10] sm:$0xff]   ;;  %v522_v26 = vld [vmem:[#allocation8] sm:$0xff]  }
  0x31   :  { %469 = vmatpush3.bf16.msra.mxu1 %v516_v16  ;;  %v425_v30 = vld [vmem:[%s675_s2] ss:$0 sm:$0xff]  ;;  %s394_s2 = sshll.u32 %s618_s13, 4  ;;  %s395_s2 = int_to_ptr.vmem [resolvable:$true] %s394_s2 }
  0x32   :  { %440 = vmatpush3.bf16.msra.mxu0 %v501_v6  ;;  %470 = vmatprep.subr.bf16.mxu1 %v616_v0  ;;  %v426_v39 = vld [vmem:[%s677_s4] ss:$0 sm:$0xff]  ;;  %s583_s14 = scalar_lea.vmem %s395_s2, 256  ;;  %p588_p2 = scmp.lt.s32.totalorder %s395_s2, %s395_s2 }
  0x33   :  { %441 = vmatprep.subr.bf16.mxu0 %v502_v7  ;;  %p584_p1 = scmp.ne.s32.totalorder %s395_s2, %s583_s14  ;;  %p589_p3 = scmp.lt.s32.totalorder %s583_s14, %s583_s14 }
  0x35   :  { %471 = vmatpush3.bf16.msra.mxu1 %v517_v19  ;;  %p590_p4 = por %p589_p3, %p588_p2 }
  0x36   :  { %442 = vmatpush3.bf16.msra.mxu0 %v503_v8  ;;  %472 = vmatprep.subr.bf16.mxu1 %v616_v0 }
  0x37   :  { %443 = vmatprep.subr.bf16.mxu0 %v504_v9  ;;  %p591_p5 = pnand %p590_p4, %p584_p1 }
  0x39   :  { %473 = vmatpush3.bf16.msra.mxu1 %v518_v21 }
  0x3a   :  { %444 = vmatpush3.bf16.msra.mxu0 %v505_v10  ;;  %474 = vmatprep.subr.bf16.mxu1 %v616_v0 }
  0x3b   :  { %445 = vmatprep.subr.bf16.mxu0 %v506_v11 }
  0x3d   :  { %475 = vmatpush3.bf16.msra.mxu1 %v519_v23 }
  0x3e   :  { %446 = vmatpush3.bf16.msra.mxu0 %v507_v12  ;;  %476 = vmatprep.subr.bf16.mxu1 %v616_v0 }
  0x3f   :  { %447 = vmatprep.subr.bf16.mxu0 %v508_v15 }
  0x41   :  { %477 = vmatpush3.bf16.msra.mxu1 %v520_v24 }
  0x42   :  { %448 = vmatpush3.bf16.msra.mxu0 %v509_v17  ;;  %478 = vmatprep.subr.bf16.mxu1 %v616_v0 }
  0x43   :  { %449 = vmatprep.subr.bf16.mxu0 %v510_v18 }
  0x45   :  { %479 = vmatpush3.bf16.msra.mxu1 %v521_v25 }
  0x46   :  { %450 = vmatpush3.bf16.msra.mxu0 %v511_v20  ;;  %480 = vmatprep.subr.bf16.mxu1 %v616_v0 }
  0x49   :  { %244 = vmatmul.mubr.bf16.vlgmr.msra.gmra.mxu0 %v512_v22  ;;  %481 = vmatpush3.bf16.msra.mxu1 %v522_v26 }
 0x109   :  { %v451_v27 = vpop.f32.mrf.mxu0 }
 0x10b   :  { %v452_v28 = vpop.f32.mrf.mxu0 }
 0x10c   :  { %v453_v29 = vadd.f32 %v452_v28, %v451_v27 }
 0x10d   :  { %v454_v31 = vpop.f32.mrf.mxu0 }
 0x10e   :  { %v268_v33 = vadd.f32 %v453_v29, %v425_v30 }
 0x10f   :  { %v455_v32 = vpop.f32.mrf.mxu0 }
 0x110   :  { %v456_v34 = vadd.f32 %v455_v32, %v454_v31  ;;  %v270_v36 = vmax.f32 %v268_v33, 0.0 }
 0x112   :  { %v269_v35 = vadd.f32 %v456_v34, %v425_v30 }
 0x114   :  { %v271_v37 = vmax.f32 %v269_v35, 0.0 }
 0x116   :  { %v272_v38 = vpack.c.bf16 %v271_v37, %v270_v36 }
 0x118   :  { %483 = vmatmul.mubr.bf16.vlgmr.msra.gmra.mxu1 %v272_v38 }
 0x1d8   :  { %v378_v40 = vpop.f32.mrf.mxu1 }
 0x1d9   :  { %v379_v41 = vadd.f32 %v426_v39, %v378_v40 }
 0x1da   :  { %v484_v42 = vpop.f32.mrf.mxu1 }
 0x1db   :  { %v385_v43 = vmax.f32 %v379_v41, 0.0 }
 0x1dc   :  { %v381_v44 = vpop.f32.mrf.mxu1 }
 0x1dd   :  { %387 = vst [vmem:[#allocation9] sm:$0xff] %v385_v43  ;;  %v382_v45 = vadd.f32 %v426_v39, %v381_v44 }
 0x1de   :  { %v485_v46 = vpop.f32.mrf.mxu1 }
 0x1df   :  { %v386_v47 = vmax.f32 %v382_v45, 0.0 }
 0x1e1   :  { %388 = vst [vmem:[#allocation9 + $0x8] sm:$0xff] %v386_v47 }
 0x1e2   :  { %594 = shalt.err (!%p591_p5)
}
 0x1e3   :  { %400 = dma.vmem_to_hbm [thread:$0]  %s395_s2, 256, %s678_s5, [#allocation5], %s613_s28, %s613_s28, %s614_s29  }
 0x1e4   :  { %607 = dma.done.wait [#allocation5], 256  }
 0x1e5   :  { %608 = vsyncadd [#allocation5], 4294967040 }
 0x1e6   :  { %404 = vsyncpa [#allocation4], 1 }
 0x1e7   :  { %405 = vsyncpa [#allocation7], 1 }
 0x1e8   :  { %406 = vsyncpa [#allocation5], 1 }

</bundles_post_ra>
